<compile_context>
chip_gen: v7x
topology: tpu7x:2x2x1
jax: 0.10.0
libtpu: 0.0.40
codegen_flags: <defaults>
</compile_context>

<pallas_src>
import jax
import jax.numpy as jnp
from jax.experimental import pallas as pl
from jax.experimental.pallas import tpu as pltpu


def _nw_kernel(w_ref, q_ref, k_ref, v_ref, o_ref):
    # w_ref: SMEM (1,) scalar parameter
    # q_ref: (TN, 1)   k_ref, v_ref: (TN, M)   o_ref: (TN, 1)
    w = w_ref[0]
    q = q_ref[...].astype(jnp.float32)
    k = k_ref[...].astype(jnp.float32)   # load-narrow / compute-wide: bf16
    v = v_ref[...].astype(jnp.float32)   # inputs are upcast here, not in XLA.

    # scores = -((q - k) * w)^2 / 2   (matches the PyTorch module exactly)
    d = (q - k) * w
    s = -0.5 * (d * d)

    # numerically-stable softmax over the M (lane) axis; divide only the
    # (TN, 1) reduced numerator/denominator instead of the full (TN, M) tile.
    s_max = jnp.max(s, axis=1, keepdims=True)
    e = jnp.exp(s - s_max)
    denom = jnp.sum(e, axis=1, keepdims=True)
    num = jnp.sum(e * v, axis=1, keepdims=True)
    o_ref[...] = (num * pl.reciprocal(denom, approx=False)).astype(o_ref.dtype)
    # TODO(synk): a lane-dense (1, TN) output slab would need an in-kernel
    # (TN,1)->(1,TN) relayout; output bytes are tiny vs K/V so the column
    # store is kept for lowering robustness.


def _round_up(x, m):
    return (x + m - 1) // m * m


def _choose_tile_rows(n, m, itemsize):
    # Size one K tile + one V tile to ~8 MiB (=> ~16 MiB once double-buffered),
    # comfortably inside the 32 MiB vmem limit requested below on every
    # generation (v5e/v6e: 128 MiB physical VMEM, v7x: 64 MiB).
    budget = 8 * 1024 * 1024
    per_row = 2 * m * itemsize
    tn = budget // max(per_row, 1)
    tn = max(8, min(4096, tn))
    tn = min(tn, _round_up(n, 8))
    return max(8, (tn // 8) * 8)


def nw_kernel_regression(queries, keys, values, w, *, tile_rows=None):
    """queries: (N,), keys: (N, M), values: (N, M), w: (1,) -> (N,) float32."""
    n, m = keys.shape
    q2 = queries.reshape(n, 1)
    w1 = w.reshape(1).astype(jnp.float32)

    if tile_rows is None:
        tn = _choose_tile_rows(n, m, jnp.dtype(keys.dtype).itemsize)
    else:
        tn = max(8, (int(tile_rows) // 8) * 8)
    grid = (pl.cdiv(n, tn),)

    out = pl.pallas_call(
        _nw_kernel,
        out_shape=jax.ShapeDtypeStruct((n, 1), jnp.float32),
        grid=grid,
        in_specs=[
            pl.BlockSpec(memory_space=pltpu.SMEM),       # w (scalar parameter)
            pl.BlockSpec((tn, 1), lambda i: (i, 0)),     # queries column tile
            pl.BlockSpec((tn, m), lambda i: (i, 0)),     # keys tile
            pl.BlockSpec((tn, m), lambda i: (i, 0)),     # values tile
        ],
        out_specs=pl.BlockSpec((tn, 1), lambda i: (i, 0)),
        compiler_params=pltpu.CompilerParams(
            dimension_semantics=("parallel",),
            vmem_limit_bytes=32 * 1024 * 1024,
        ),
    )(w1, q2, keys, values)
    return out.reshape(-1)


def _reference(queries, keys, values, w):
    # pure-JAX reference mirroring the PyTorch forward
    n, m = keys.shape
    q = jnp.repeat(queries, m).reshape(n, m)
    s = -(((q - keys) * w[0]) ** 2) / 2
    attn = jax.nn.softmax(s, axis=1)
    return jnp.einsum("nm,nm->n", attn, values)


if __name__ == "__main__":
    key = jax.random.PRNGKey(0)
    kq, kk, kv, kw = jax.random.split(key, 4)

    # Small shapes consistent with the module: N query points, M key/value pairs.
    N, M = 16, 64
    queries = jax.random.normal(kq, (N,), dtype=jnp.float32)
    keys = jax.random.normal(kk, (N, M), dtype=jnp.float32)
    values = jax.random.normal(kv, (N, M), dtype=jnp.float32)
    # deterministic parameter init mimicking nn.Parameter(torch.rand((1,)))
    w = jax.random.uniform(kw, (1,), dtype=jnp.float32)

    out = nw_kernel_regression(queries, keys, values, w)
    jax.block_until_ready(out)
    ref = _reference(queries, keys, values, w)
    assert out.shape == (N,)
    assert jnp.allclose(out, ref, atol=1e-5, rtol=1e-5)

    # Exercise the multi-tile grid path (several blocks plus a ragged tail).
    N2, M2 = 100, 64
    q_big = jax.random.normal(kq, (N2,), dtype=jnp.float32)
    k_big = jax.random.normal(kk, (N2, M2), dtype=jnp.float32)
    v_big = jax.random.normal(kv, (N2, M2), dtype=jnp.float32)
    out2 = nw_kernel_regression(q_big, k_big, v_big, w, tile_rows=32)
    jax.block_until_ready(out2)
    ref2 = _reference(q_big, k_big, v_big, w)
    assert jnp.allclose(out2, ref2, atol=1e-5, rtol=1e-5)

    print("KERNEL_OK")
</pallas_src>

<mosaic_0001>
module attributes {stable_mosaic.version = 11 : i64} {
  func.func @_nw_kernel(%arg0: i32, %arg1: memref<1xf32, #tpu.memory_space<smem>>, %arg2: memref<16x1xf32, #tpu.memory_space<vmem>>, %arg3: memref<16x64xf32, #tpu.memory_space<vmem>>, %arg4: memref<16x64xf32, #tpu.memory_space<vmem>>, %arg5: memref<16x1xf32, #tpu.memory_space<vmem>>) attributes {dimension_semantics = [#tpu.dimension_semantics<parallel>], iteration_bounds = array<i64: 1>, scalar_prefetch = 0 : i64, scratch_operands = 0 : i64, tpu.core_type = #tpu.core_type<tc>, window_params = [{transform_indices = @transform_0, window_bounds = array<i64: 1>}, {transform_indices = @transform_1, window_bounds = array<i64: 16, 1>}, {transform_indices = @transform_2, window_bounds = array<i64: 16, 64>}, {transform_indices = @transform_3, window_bounds = array<i64: 16, 64>}, {transform_indices = @transform_4, window_bounds = array<i64: 16, 1>}]} {
    %c0 = arith.constant 0 : index
    %0 = memref.load %arg1[%c0] : memref<1xf32, #tpu.memory_space<smem>>
    %c0_0 = arith.constant 0 : index
    %c0_1 = arith.constant 0 : index
    %1 = vector.load %arg2[%c0_0, %c0_1] : memref<16x1xf32, #tpu.memory_space<vmem>>, vector<16x1xf32>
    %c0_2 = arith.constant 0 : index
    %c0_3 = arith.constant 0 : index
    %2 = vector.load %arg3[%c0_2, %c0_3] : memref<16x64xf32, #tpu.memory_space<vmem>>, vector<16x64xf32>
    %c0_4 = arith.constant 0 : index
    %c0_5 = arith.constant 0 : index
    %3 = vector.load %arg4[%c0_4, %c0_5] : memref<16x64xf32, #tpu.memory_space<vmem>>, vector<16x64xf32>
    %4 = vector.broadcast %1 : vector<16x1xf32> to vector<16x64xf32>
    %5 = arith.subf %4, %2 : vector<16x64xf32>
    %6 = vector.broadcast %0 : f32 to vector<16x64xf32>
    %7 = arith.mulf %5, %6 : vector<16x64xf32>
    %8 = arith.mulf %7, %7 : vector<16x64xf32>
    %cst = arith.constant -5.000000e-01 : f32
    %9 = vector.broadcast %cst : f32 to vector<16x64xf32>
    %10 = arith.mulf %9, %8 : vector<16x64xf32>
    %cst_6 = arith.constant dense<0xFF800000> : vector<16xf32>
    %11 = vector.multi_reduction <maximumf>, %10, %cst_6 [1] : vector<16x64xf32> to vector<16xf32>
    %12 = vector.shape_cast %11 : vector<16xf32> to vector<16x1xf32>
    %13 = vector.broadcast %12 : vector<16x1xf32> to vector<16x64xf32>
    %14 = arith.subf %10, %13 : vector<16x64xf32>
    %15 = math.exp %14 : vector<16x64xf32>
    %cst_7 = arith.constant dense<0.000000e+00> : vector<16xf32>
    %16 = vector.multi_reduction <add>, %15, %cst_7 [1] : vector<16x64xf32> to vector<16xf32>
    %17 = vector.shape_cast %16 : vector<16xf32> to vector<16x1xf32>
    %18 = arith.mulf %15, %3 : vector<16x64xf32>
    %cst_8 = arith.constant dense<0.000000e+00> : vector<16xf32>
    %19 = vector.multi_reduction <add>, %18, %cst_8 [1] : vector<16x64xf32> to vector<16xf32>
    %20 = vector.shape_cast %19 : vector<16xf32> to vector<16x1xf32>
    %21 = tpu.reciprocal %17 : vector<16x1xf32> -> vector<16x1xf32>
    %22 = arith.mulf %20, %21 : vector<16x1xf32>
    %c0_9 = arith.constant 0 : index
    %c0_10 = arith.constant 0 : index
    %23 = vector.load %arg5[%c0_9, %c0_10] : memref<16x1xf32, #tpu.memory_space<vmem>>, vector<16x1xf32>
    tpu.vector_store %arg5[%c0_9, %c0_10], %22 {strides = array<i32>} : memref<16x1xf32, #tpu.memory_space<vmem>>, vector<16x1xf32>,
    return
  }
  func.func @transform_0(%arg0: i32) -> i32 {
    %c0_i32 = arith.constant 0 : i32
    %c0_i32_0 = arith.constant 0 : i32
    return %c0_i32 : i32
  }
  func.func @transform_1(%arg0: i32) -> (i32, i32) {
    %c0_i32 = arith.constant 0 : i32
    %c0_i32_0 = arith.constant 0 : i32
    return %arg0, %c0_i32 : i32, i32
  }
  func.func @transform_2(%arg0: i32) -> (i32, i32) {
    %c0_i32 = arith.constant 0 : i32
    %c0_i32_0 = arith.constant 0 : i32
    return %arg0, %c0_i32 : i32, i32
  }
  func.func @transform_3(%arg0: i32) -> (i32, i32) {
    %c0_i32 = arith.constant 0 : i32
    %c0_i32_0 = arith.constant 0 : i32
    return %arg0, %c0_i32 : i32, i32
  }
  func.func @transform_4(%arg0: i32) -> (i32, i32) {
    %c0_i32 = arith.constant 0 : i32
    %c0_i32_0 = arith.constant 0 : i32
    return %arg0, %c0_i32 : i32, i32
  }
}

</mosaic_0001>

<bundles_post_ra>
// kernel: tpu_custom_call.1
= control target key start
LH: loop header
LB: loop body
LE: loop exit
PB: predicated region body
PF: predicated region fallthrough
CT: control target
= control target key end

     0   :  { %10 = vsyncpa [#allocation4], 0  ;;  %s134_s15 = smov [#allocation3]   ;;  %s202_s0 = inlined_call_operand.<no memory space> [shape: f32[1], index: 0, kind: input, shape index: {}]   ;;  %s203_s1 = inlined_call_operand.vmem [shape: f32[16,1], index: 1, kind: input, shape index: {}]   ;;  %s204_s2 = inlined_call_operand.vmem [shape: f32[16,64], index: 2, kind: input, shape index: {}]   ;;  %s205_s3 = inlined_call_operand.hbm [shape: f32[16,64], index: 3, kind: input, shape index: {}]   ;;  %s206_s4 = inlined_call_operand.vmem [shape: f32[16,1], index: 4, kind: output, shape index: {}]  }
   0x1   :  { %s22_s16 = sshll.u32 %s134_s15, 4  ;;  %s110_s19 = scalar_lea.hbm %s205_s3, 256  ;;  %s23_s16 = int_to_ptr.vmem [resolvable:$true] %s22_s16 }
   0x2   :  { %p111_p0 = scmp.ne.s32.totalorder %s205_s3, %s110_s19  ;;  %p114_p1 = scmp.lt.u32.totalorder %s110_s19, %s205_s3 }
   0x4   :  { %p116_p2 = pnand %p114_p1, %p111_p0 }
   0x6   :  { %119 = shalt.err (!%p116_p2)
}
   0x7   :  { %s120_s24 = scalar_lea.vmem %s23_s16, 256  ;;  %p125_p4 = scmp.lt.s32.totalorder %s23_s16, %s23_s16 }
   0x8   :  { %p121_p3 = scmp.ne.s32.totalorder %s23_s16, %s120_s24  ;;  %p126_p5 = scmp.lt.s32.totalorder %s120_s24, %s120_s24 }
   0xa   :  { %p127_p6 = por %p126_p5, %p125_p4 }
   0xc   :  { %p128_p7 = pnand %p127_p6, %p121_p3 }
   0xe   :  { %131 = shalt.err (!%p128_p7)
}
   0xf   :  { %s135_s25 = smov 128   ;;  %s136_s26 = smov 8  }
  0x10   :  { %28 = dma.hbm_to_vmem [thread:$0]  %s205_s3, 256, %s23_s16, [#allocation4], %s135_s25, %s135_s25, %s136_s26  }
  0x11   :  { %132 = dma.done.wait [#allocation4], 256  }
  0x12   :  { %133 = vsyncadd [#allocation4], 4294967040  ;;  %v137_v0 = vmov 0   ;;  %v33_v1 = vld [vmem:[%s203_s1] sm:$0xff]  ;;  %v34_v2 = vld [vmem:[%s203_s1 + $0x8] sm:$0xff]  ;;  %v51_v4 = vstv %s202_s0  ;;  %vm58_vm0 = vcmask 523264  }
  0x13   :  { %101 = vset.pattern.permute.xlu0 %v137_v0  ;;  %v35_v3 = vld [vmem:[%s204_s2] sm:$0xff]  ;;  %v36_v7 = vld [vmem:[%s204_s2 + $0x8] sm:$0xff]  ;;  %vm89_vm1 = vcmask 7168  }
  0x14   :  { %41 = vperm.xlu0 %101, %v33_v1   ;;  %v37_v26 = vld [vmem:[#allocation3] sm:$0xff]  ;;  %v38_v30 = vld [vmem:[#allocation3 + $0x8] sm:$0xff] }
  0x18   :  { %46 = vperm.xlu0 %101, %v34_v2  }
  0x93   :  { %v42_v5 = vpop.permute.xlu0 %41 }
  0x94   :  { %v49_v6 = vsub.f32 %v42_v5, %v35_v3 }
  0x96   :  { %v52_v8 = vmul.f32 %v51_v4, %v49_v6 }
  0x97   :  { %v47_v9 = vpop.permute.xlu0 %46 }
  0x98   :  { %v50_v10 = vsub.f32 %v47_v9, %v36_v7  ;;  %v54_v11 = vmul.f32 %v52_v8, %v52_v8 }
  0x9a   :  { %v53_v12 = vmul.f32 %v51_v4, %v50_v10  ;;  %v56_v13 = vmul.f32 -0.5, %v54_v11 }
  0x9c   :  { %v59_v14 = vsel %vm58_vm0, %v56_v13, -inf  ;;  %v55_v15 = vmul.f32 %v53_v12, %v53_v12 }
  0x9d   :  { %60 = vmax.xlane.f32.xlu1 %v59_v14 }
  0x9e   :  { %v57_v16 = vmul.f32 -0.5, %v55_v15 }
  0xa0   :  { %v62_v17 = vsel %vm58_vm0, %v57_v16, -inf }
  0xa1   :  { %63 = vmax.xlane.f32.xlu1 %v62_v17 }
 0x12a   :  { %v61_v18 = vpop.xlane.xlu1 %60 }
 0x12b   :  { %v65_v19 = vsub.f32 %v56_v13, %v61_v18 }
 0x12d   :  { %v67_v20 = vmul.f32 1.442695, %v65_v19 }
 0x12e   :  { %v64_v21 = vpop.xlane.xlu1 %63 }
 0x12f   :  { %102 = vpow2.f32 %v67_v20  ;;  %v66_v22 = vsub.f32 %v57_v16, %v64_v21 }
 0x131   :  { %v69_v23 = vmul.f32 1.442695, %v66_v22 }
 0x133   :  { %104 = vpow2.f32 %v69_v23 }
 0x139   :  { %v103_v24 = vpop.eup %102 }
 0x13a   :  { %v71_v25 = vsel %vm58_vm0, %v103_v24, 0.0  ;;  %v77_v29 = vmul.f32 %v103_v24, %v37_v26 }
 0x13b   :  { %72 = vadd.xlane.f32.xlu0 %v71_v25 }
 0x13c   :  { %v79_v31 = vsel %vm58_vm0, %v77_v29, 0.0 }
 0x13d   :  { %v105_v27 = vpop.eup %104 }
 0x13e   :  { %v74_v28 = vsel %vm58_vm0, %v105_v27, 0.0  ;;  %v78_v32 = vmul.f32 %v105_v27, %v38_v30 }
 0x13f   :  { %75 = vadd.xlane.f32.xlu1 %v74_v28 }
 0x140   :  { %v82_v33 = vsel %vm58_vm0, %v78_v32, 0.0 }
 0x143   :  { %80 = vadd.xlane.f32.xlu1 %v79_v31 }
 0x147   :  { %83 = vadd.xlane.f32.xlu1 %v82_v33 }
 0x1c8   :  { %v73_v34 = vpop.xlane.xlu0 %72 }
 0x1c9   :  { %106 = vrcp.f32 %v73_v34 }
 0x1cc   :  { %v76_v35 = vpop.xlane.xlu1 %75 }
 0x1cd   :  { %108 = vrcp.f32 %v76_v35 }
 0x1d0   :  { %v81_v36 = vpop.xlane.xlu1 %80 }
 0x1d3   :  { %v107_v37 = vpop.eup %106 }
 0x1d4   :  { %v87_v38 = vmul.f32 %v107_v37, %v81_v36  ;;  %v84_v40 = vpop.xlane.xlu1 %83 }
 0x1d6   :  { %90 = vst.msk [vmem:[%s206_s4] sm:$0xff] %vm89_vm1, %v87_v38 }
 0x1d7   :  { %v109_v39 = vpop.eup %108 }
 0x1d8   :  { %v88_v41 = vmul.f32 %v109_v39, %v84_v40 }
 0x1da   :  { %91 = vst.msk [vmem:[%s206_s4 + $0x8] sm:$0xff] %vm89_vm1, %v88_v41 }
 0x1db   :  { %96 = vsyncpa [#allocation4], 1 }

</bundles_post_ra>
